<compile_context>
chip_gen: v7x
topology: tpu7x:2x2x1
jax: 0.10.0
libtpu: 0.0.40
codegen_flags: <defaults>
</compile_context>

<pallas_src>
import jax
import jax.numpy as jnp
from jax import lax
from jax.experimental import pallas as pl
from jax.experimental.pallas import tpu as pltpu


LANE = 128   # lane width of a vreg
SUBLANE = 8  # sublane depth of a vreg


def _round_up(n, m):
    return ((n + m - 1) // m) * m


def _pad_to(a, shape):
    """Zero-pad array `a` up to `shape` (trailing padding only)."""
    pads = [(0, s - d) for s, d in zip(shape, a.shape)]
    return jnp.pad(a, pads)


def rnn_forward_kernel(x_ref, emb_ref, wih_ref, whh_ref, bias_ref,
                       wfc_ref, bfc_ref, out_ref):
    """Whole forward pass on one TensorCore (small, lane-padded shapes -> single block).

    x_ref    : (T, Bp)  int32  token ids (time-major, batch zero-padded)
    emb_ref  : (Vp, Ep) f32    embedding table (zero-padded)
    wih_ref  : (Ep, Hp) f32    W_ih^T (zero-padded)
    whh_ref  : (Hp, Hp) f32    W_hh^T (zero-padded)
    bias_ref : (1, Hp)  f32    b_ih + b_hh (zero-padded)
    wfc_ref  : (Hp, Vp) f32    W_fc^T (zero-padded)
    bfc_ref  : (1, Vp)  f32    b_fc (zero-padded)
    out_ref  : (Bp, Vp) f32    logits
    """
    T, B = x_ref.shape
    Vp = emb_ref.shape[0]
    Hp = whh_ref.shape[0]

    # ---- Prologue (fully parallel over all T*B positions) -------------------
    # Embedding lookup as one exact one-hot matmul on the MXU for ALL timesteps.
    x = x_ref[...]                                               # (T, B) int32
    vocab_iota = lax.broadcasted_iota(jnp.int32, (T, B, Vp), 2)
    onehot = (x[:, :, None] == vocab_iota).astype(jnp.float32)   # (T, B, Vp)
    onehot2d = onehot.reshape(T * B, Vp)                         # lane dim unchanged

    x_emb = jnp.dot(onehot2d, emb_ref[...],
                    preferred_element_type=jnp.float32)          # (T*B, Ep)
    # Input projection + folded bias for every step, in one matmul.
    x_proj = (jnp.dot(x_emb, wih_ref[...],
                      preferred_element_type=jnp.float32)
              + bias_ref[...])                                   # (T*B, Hp)
    x_proj = x_proj.reshape(T, B, Hp)                            # time-major slabs

    # ---- Serial recurrence: only the h @ W_hh^T dependency remains ----------
    whh = whh_ref[...]
    h = jnp.zeros((B, Hp), dtype=jnp.float32)
    # T is small & static: unrolled loop keeps the chain visible to the
    # scheduler.  TODO(synk): switch to lax.fori_loop(unroll=k) if T grows.
    for t in range(T):
        h = jnp.tanh(x_proj[t]
                     + jnp.dot(h, whh, preferred_element_type=jnp.float32))

    # ---- Final linear layer on the last hidden state -------------------------
    out_ref[...] = (jnp.dot(h, wfc_ref[...], preferred_element_type=jnp.float32)
                    + bfc_ref[...])


def prepare_params(emb, w_ih, w_hh, b_ih, b_hh, w_fc, b_fc):
    """One-time parameter prep: transpose, fold biases, zero-pad to lane-dense shapes."""
    V, E = emb.shape
    H = w_hh.shape[0]
    Vp = _round_up(V, LANE)
    Ep = _round_up(E, LANE)
    Hp = _round_up(H, LANE)

    params = {
        "emb":   _pad_to(emb.astype(jnp.float32), (Vp, Ep)),
        "wih_t": _pad_to(w_ih.T.astype(jnp.float32), (Ep, Hp)),
        "whh_t": _pad_to(w_hh.T.astype(jnp.float32), (Hp, Hp)),
        "bias":  _pad_to((b_ih + b_hh).astype(jnp.float32).reshape(1, H), (1, Hp)),
        "wfc_t": _pad_to(w_fc.T.astype(jnp.float32), (Hp, Vp)),
        "bfc":   _pad_to(b_fc.astype(jnp.float32).reshape(1, V), (1, Vp)),
        "vocab_size": V,
    }
    return jax.tree_util.tree_map(
        lambda a: jax.device_put(a) if isinstance(a, jnp.ndarray) else a, params)


def rnn_forward(x, params):
    """Run the Pallas kernel on token ids x: (B, T) -> logits (B, V)."""
    B, T = x.shape
    V = params["vocab_size"]
    Vp = params["wfc_t"].shape[1]
    Bp = _round_up(B, SUBLANE)

    # Time-major, batch padded to a sublane multiple (padded rows use token 0;
    # their outputs are sliced off below).
    x_tb = jnp.zeros((T, Bp), dtype=jnp.int32).at[:, :B].set(x.T.astype(jnp.int32))

    vmem = pl.BlockSpec(memory_space=pltpu.MemorySpace.VMEM)
    out_padded = pl.pallas_call(
        rnn_forward_kernel,
        out_shape=jax.ShapeDtypeStruct((Bp, Vp), jnp.float32),
        in_specs=[vmem] * 7,
        out_specs=vmem,
    )(x_tb, params["emb"], params["wih_t"], params["whh_t"],
      params["bias"], params["wfc_t"], params["bfc"])

    return out_padded[:B, :V]


def rnn_forward_ref(x, emb, w_ih, w_hh, b_ih, b_hh, w_fc, b_fc):
    """Pure-JAX reference mirroring the PyTorch module semantics."""
    e = emb[x]                                       # (B, T, E) embedding gather
    B, T, _ = e.shape
    H = w_hh.shape[0]
    h = jnp.zeros((B, H), dtype=jnp.float32)
    for t in range(T):
        h = jnp.tanh(e[:, t] @ w_ih.T + b_ih + h @ w_hh.T + b_hh)
    return h @ w_fc.T + b_fc                         # (B, V)


if __name__ == "__main__":
    # Small shapes consistent with the module's forward pass.
    vocab_size, embedding_dim, hidden_units = 32, 16, 32
    batch, seq = 4, 8

    key = jax.random.PRNGKey(0)
    k_emb, k_wih, k_whh, k_bih, k_bhh, k_wfc, k_bfc, k_x = jax.random.split(key, 8)

    # Deterministic init mimicking PyTorch defaults (N(0,1) embedding,
    # U(-1/sqrt(H), 1/sqrt(H)) for RNN / Linear).
    bound = 1.0 / jnp.sqrt(jnp.float32(hidden_units))
    emb = jax.random.normal(k_emb, (vocab_size, embedding_dim), jnp.float32)
    w_ih = jax.random.uniform(k_wih, (hidden_units, embedding_dim), jnp.float32, -bound, bound)
    w_hh = jax.random.uniform(k_whh, (hidden_units, hidden_units), jnp.float32, -bound, bound)
    b_ih = jax.random.uniform(k_bih, (hidden_units,), jnp.float32, -bound, bound)
    b_hh = jax.random.uniform(k_bhh, (hidden_units,), jnp.float32, -bound, bound)
    w_fc = jax.random.uniform(k_wfc, (vocab_size, hidden_units), jnp.float32, -bound, bound)
    b_fc = jax.random.uniform(k_bfc, (vocab_size,), jnp.float32, -bound, bound)

    x = jax.random.randint(k_x, (batch, seq), 0, vocab_size, jnp.int32)

    # One-time parameter preparation (transposes / padding NOT on the per-call path).
    params = prepare_params(emb, w_ih, w_hh, b_ih, b_hh, w_fc, b_fc)

    out = rnn_forward(x, params)
    out = jax.block_until_ready(out)

    ref = rnn_forward_ref(x, emb, w_ih, w_hh, b_ih, b_hh, w_fc, b_fc)
    assert out.shape == (batch, vocab_size)
    assert jnp.max(jnp.abs(out - ref)) < 1e-3, "Pallas kernel mismatch vs JAX reference"

    print("KERNEL_OK")
</pallas_src>

<mosaic_0001>
module attributes {stable_mosaic.version = 11 : i64} {
  func.func @rnn_forward_kernel(%arg0: memref<8x8xi32, #tpu.memory_space<vmem>>, %arg1: memref<128x128xf32, #tpu.memory_space<vmem>>, %arg2: memref<128x128xf32, #tpu.memory_space<vmem>>, %arg3: memref<128x128xf32, #tpu.memory_space<vmem>>, %arg4: memref<1x128xf32, #tpu.memory_space<vmem>>, %arg5: memref<128x128xf32, #tpu.memory_space<vmem>>, %arg6: memref<1x128xf32, #tpu.memory_space<vmem>>, %arg7: memref<8x128xf32, #tpu.memory_space<vmem>>) attributes {dimension_semantics = [], scalar_prefetch = 0 : i64, scratch_operands = 0 : i64, tpu.core_type = #tpu.core_type<tc>} {
    %c0 = arith.constant 0 : index
    %c0_0 = arith.constant 0 : index
    %0 = vector.load %arg0[%c0, %c0_0] : memref<8x8xi32, #tpu.memory_space<vmem>>, vector<8x8xi32>
    %1 = tpu.iota {dimensions = array<i32: 2>} : vector<8x8x128xi32>
    %2 = vector.shape_cast %0 : vector<8x8xi32> to vector<8x8x1xi32>
    %3 = vector.broadcast %2 : vector<8x8x1xi32> to vector<8x8x128xi32>
    %4 = arith.cmpi eq, %3, %1 : vector<8x8x128xi32>
    %5 = arith.extui %4 : vector<8x8x128xi1> to vector<8x8x128xi32>
    %6 = arith.sitofp %5 : vector<8x8x128xi32> to vector<8x8x128xf32>
    %7 = vector.shape_cast %6 : vector<8x8x128xf32> to vector<64x128xf32>
    %c0_1 = arith.constant 0 : index
    %c0_2 = arith.constant 0 : index
    %8 = vector.load %arg1[%c0_1, %c0_2] : memref<128x128xf32, #tpu.memory_space<vmem>>, vector<128x128xf32>
    %cst = arith.constant dense<0.000000e+00> : vector<64x128xf32>
    %9 = tpu.matmul %7, %8, %cst {dimension_numbers = #tpu.dot_dimension_numbers<[1], [0], [0], [1], [0, 0, 1, 1], [], []>} : vector<64x128xf32>, vector<128x128xf32>, vector<64x128xf32> -> vector<64x128xf32>
    %c0_3 = arith.constant 0 : index
    %c0_4 = arith.constant 0 : index
    %10 = vector.load %arg2[%c0_3, %c0_4] : memref<128x128xf32, #tpu.memory_space<vmem>>, vector<128x128xf32>
    %cst_5 = arith.constant dense<0.000000e+00> : vector<64x128xf32>
    %11 = tpu.matmul %9, %10, %cst_5 {dimension_numbers = #tpu.dot_dimension_numbers<[1], [0], [0], [1], [0, 0, 1, 1], [], []>} : vector<64x128xf32>, vector<128x128xf32>, vector<64x128xf32> -> vector<64x128xf32>
    %c0_6 = arith.constant 0 : index
    %c0_7 = arith.constant 0 : index
    %12 = vector.load %arg4[%c0_6, %c0_7] : memref<1x128xf32, #tpu.memory_space<vmem>>, vector<1x128xf32>
    %13 = vector.broadcast %12 : vector<1x128xf32> to vector<64x128xf32>
    %14 = arith.addf %11, %13 : vector<64x128xf32>
    %15 = vector.shape_cast %14 : vector<64x128xf32> to vector<8x8x128xf32>
    %c0_8 = arith.constant 0 : index
    %c0_9 = arith.constant 0 : index
    %16 = vector.load %arg3[%c0_8, %c0_9] : memref<128x128xf32, #tpu.memory_space<vmem>>, vector<128x128xf32>
    %cst_10 = arith.constant 0.000000e+00 : f32
    %17 = vector.broadcast %cst_10 : f32 to vector<8x128xf32>
    %18 = vector.extract_strided_slice %15 {offsets = [0, 0, 0], sizes = [1, 8, 128], strides = [1, 1, 1]} : vector<8x8x128xf32> to vector<1x8x128xf32>
    %19 = vector.shape_cast %18 : vector<1x8x128xf32> to vector<8x128xf32>
    %cst_11 = arith.constant dense<0.000000e+00> : vector<8x128xf32>
    %20 = tpu.matmul %17, %16, %cst_11 {dimension_numbers = #tpu.dot_dimension_numbers<[1], [0], [0], [1], [0, 0, 1, 1], [], []>} : vector<8x128xf32>, vector<128x128xf32>, vector<8x128xf32> -> vector<8x128xf32>
    %21 = arith.addf %19, %20 : vector<8x128xf32>
    %22 = math.tanh %21 : vector<8x128xf32>
    %23 = vector.extract_strided_slice %15 {offsets = [1, 0, 0], sizes = [1, 8, 128], strides = [1, 1, 1]} : vector<8x8x128xf32> to vector<1x8x128xf32>
    %24 = vector.shape_cast %23 : vector<1x8x128xf32> to vector<8x128xf32>
    %cst_12 = arith.constant dense<0.000000e+00> : vector<8x128xf32>
    %25 = tpu.matmul %22, %16, %cst_12 {dimension_numbers = #tpu.dot_dimension_numbers<[1], [0], [0], [1], [0, 0, 1, 1], [], []>} : vector<8x128xf32>, vector<128x128xf32>, vector<8x128xf32> -> vector<8x128xf32>
    %26 = arith.addf %24, %25 : vector<8x128xf32>
    %27 = math.tanh %26 : vector<8x128xf32>
    %28 = vector.extract_strided_slice %15 {offsets = [2, 0, 0], sizes = [1, 8, 128], strides = [1, 1, 1]} : vector<8x8x128xf32> to vector<1x8x128xf32>
    %29 = vector.shape_cast %28 : vector<1x8x128xf32> to vector<8x128xf32>
    %cst_13 = arith.constant dense<0.000000e+00> : vector<8x128xf32>
    %30 = tpu.matmul %27, %16, %cst_13 {dimension_numbers = #tpu.dot_dimension_numbers<[1], [0], [0], [1], [0, 0, 1, 1], [], []>} : vector<8x128xf32>, vector<128x128xf32>, vector<8x128xf32> -> vector<8x128xf32>
    %31 = arith.addf %29, %30 : vector<8x128xf32>
    %32 = math.tanh %31 : vector<8x128xf32>
    %33 = vector.extract_strided_slice %15 {offsets = [3, 0, 0], sizes = [1, 8, 128], strides = [1, 1, 1]} : vector<8x8x128xf32> to vector<1x8x128xf32>
    %34 = vector.shape_cast %33 : vector<1x8x128xf32> to vector<8x128xf32>
    %cst_14 = arith.constant dense<0.000000e+00> : vector<8x128xf32>
    %35 = tpu.matmul %32, %16, %cst_14 {dimension_numbers = #tpu.dot_dimension_numbers<[1], [0], [0], [1], [0, 0, 1, 1], [], []>} : vector<8x128xf32>, vector<128x128xf32>, vector<8x128xf32> -> vector<8x128xf32>
    %36 = arith.addf %34, %35 : vector<8x128xf32>
    %37 = math.tanh %36 : vector<8x128xf32>
    %38 = vector.extract_strided_slice %15 {offsets = [4, 0, 0], sizes = [1, 8, 128], strides = [1, 1, 1]} : vector<8x8x128xf32> to vector<1x8x128xf32>
    %39 = vector.shape_cast %38 : vector<1x8x128xf32> to vector<8x128xf32>
    %cst_15 = arith.constant dense<0.000000e+00> : vector<8x128xf32>
    %40 = tpu.matmul %37, %16, %cst_15 {dimension_numbers = #tpu.dot_dimension_numbers<[1], [0], [0], [1], [0, 0, 1, 1], [], []>} : vector<8x128xf32>, vector<128x128xf32>, vector<8x128xf32> -> vector<8x128xf32>
    %41 = arith.addf %39, %40 : vector<8x128xf32>
    %42 = math.tanh %41 : vector<8x128xf32>
    %43 = vector.extract_strided_slice %15 {offsets = [5, 0, 0], sizes = [1, 8, 128], strides = [1, 1, 1]} : vector<8x8x128xf32> to vector<1x8x128xf32>
    %44 = vector.shape_cast %43 : vector<1x8x128xf32> to vector<8x128xf32>
    %cst_16 = arith.constant dense<0.000000e+00> : vector<8x128xf32>
    %45 = tpu.matmul %42, %16, %cst_16 {dimension_numbers = #tpu.dot_dimension_numbers<[1], [0], [0], [1], [0, 0, 1, 1], [], []>} : vector<8x128xf32>, vector<128x128xf32>, vector<8x128xf32> -> vector<8x128xf32>
    %46 = arith.addf %44, %45 : vector<8x128xf32>
    %47 = math.tanh %46 : vector<8x128xf32>
    %48 = vector.extract_strided_slice %15 {offsets = [6, 0, 0], sizes = [1, 8, 128], strides = [1, 1, 1]} : vector<8x8x128xf32> to vector<1x8x128xf32>
    %49 = vector.shape_cast %48 : vector<1x8x128xf32> to vector<8x128xf32>
    %cst_17 = arith.constant dense<0.000000e+00> : vector<8x128xf32>
    %50 = tpu.matmul %47, %16, %cst_17 {dimension_numbers = #tpu.dot_dimension_numbers<[1], [0], [0], [1], [0, 0, 1, 1], [], []>} : vector<8x128xf32>, vector<128x128xf32>, vector<8x128xf32> -> vector<8x128xf32>
    %51 = arith.addf %49, %50 : vector<8x128xf32>
    %52 = math.tanh %51 : vector<8x128xf32>
    %53 = vector.extract_strided_slice %15 {offsets = [7, 0, 0], sizes = [1, 8, 128], strides = [1, 1, 1]} : vector<8x8x128xf32> to vector<1x8x128xf32>
    %54 = vector.shape_cast %53 : vector<1x8x128xf32> to vector<8x128xf32>
    %cst_18 = arith.constant dense<0.000000e+00> : vector<8x128xf32>
    %55 = tpu.matmul %52, %16, %cst_18 {dimension_numbers = #tpu.dot_dimension_numbers<[1], [0], [0], [1], [0, 0, 1, 1], [], []>} : vector<8x128xf32>, vector<128x128xf32>, vector<8x128xf32> -> vector<8x128xf32>
    %56 = arith.addf %54, %55 : vector<8x128xf32>
    %57 = math.tanh %56 : vector<8x128xf32>
    %c0_19 = arith.constant 0 : index
    %c0_20 = arith.constant 0 : index
    %58 = vector.load %arg5[%c0_19, %c0_20] : memref<128x128xf32, #tpu.memory_space<vmem>>, vector<128x128xf32>
    %cst_21 = arith.constant dense<0.000000e+00> : vector<8x128xf32>
    %59 = tpu.matmul %57, %58, %cst_21 {dimension_numbers = #tpu.dot_dimension_numbers<[1], [0], [0], [1], [0, 0, 1, 1], [], []>} : vector<8x128xf32>, vector<128x128xf32>, vector<8x128xf32> -> vector<8x128xf32>
    %c0_22 = arith.constant 0 : index
    %c0_23 = arith.constant 0 : index
    %60 = vector.load %arg6[%c0_22, %c0_23] : memref<1x128xf32, #tpu.memory_space<vmem>>, vector<1x128xf32>
    %61 = vector.broadcast %60 : vector<1x128xf32> to vector<8x128xf32>
    %62 = arith.addf %59, %61 : vector<8x128xf32>
    %c0_24 = arith.constant 0 : index
    %c0_25 = arith.constant 0 : index
    %63 = vector.load %arg7[%c0_24, %c0_25] : memref<8x128xf32, #tpu.memory_space<vmem>>, vector<8x128xf32>
    tpu.vector_store %arg7[%c0_24, %c0_25], %62 {strides = array<i32>} : memref<8x128xf32, #tpu.memory_space<vmem>>, vector<8x128xf32>,
    return
  }
}

</mosaic_0001>

<bundles_post_ra>
// kernel: tpu_custom_call.1
= control target key start
LH: loop header
LB: loop body
LE: loop exit
PB: predicated region body
PF: predicated region fallthrough
CT: control target
= control target key end

     0   :  { %12 = vsyncpa [#allocation3], 0  ;;  %s2528_s0 = inlined_call_operand.hbm [shape: s32[8,8], index: 0, kind: input, shape index: {}]   ;;  %s2529_s1 = inlined_call_operand.hbm [shape: f32[128,128], index: 1, kind: input, shape index: {}]   ;;  %s2530_s2 = inlined_call_operand.hbm [shape: f32[128,128], index: 2, kind: input, shape index: {}]   ;;  %s2531_s3 = inlined_call_operand.hbm [shape: f32[128,128], index: 3, kind: input, shape index: {}]   ;;  %s2532_s4 = inlined_call_operand.vmem [shape: f32[1,128], index: 4, kind: input, shape index: {}]   ;;  %s2533_s5 = inlined_call_operand.hbm [shape: f32[128,128], index: 5, kind: input, shape index: {}]   ;;  %s2534_s6 = inlined_call_operand.vmem [shape: f32[1,128], index: 6, kind: input, shape index: {}]   ;;  %s2535_s7 = inlined_call_operand.hbm [shape: f32[8,128], index: 7, kind: output, shape index: {}]  }
   0x1   :  { %13 = vsyncpa [#allocation6], 0 }
   0x2   :  { %14 = vsyncpa [#allocation9], 0 }
   0x3   :  { %15 = vsyncpa [#allocation4], 0  ;;  %s2198_s24 = smov [#allocation5]   ;;  %s2058_s28 = scalar_lea.hbm %s2529_s1, 2048 }
   0x4   :  { %s31_s25 = sshll.u32 %s2198_s24, 4  ;;  %p2059_p0 = scmp.ne.s32.totalorder %s2529_s1, %s2058_s28  ;;  %s32_s25 = int_to_ptr.vmem [resolvable:$true] %s31_s25 }
   0x5   :  { %p2062_p1 = scmp.lt.u32.totalorder %s2058_s28, %s2529_s1 }
   0x7   :  { %p2064_p2 = pnand %p2062_p1, %p2059_p0 }
   0x9   :  { %2067 = shalt.err (!%p2064_p2)
}
   0xa   :  { %s2068_s10 = scalar_lea.vmem %s32_s25, 2048  ;;  %p2073_p4 = scmp.lt.s32.totalorder %s32_s25, %s32_s25 }
   0xb   :  { %p2069_p3 = scmp.ne.s32.totalorder %s32_s25, %s2068_s10  ;;  %p2074_p5 = scmp.lt.s32.totalorder %s2068_s10, %s2068_s10 }
   0xd   :  { %p2075_p6 = por %p2074_p5, %p2073_p4 }
   0xf   :  { %p2076_p7 = pnand %p2075_p6, %p2069_p3 }
  0x11   :  { %2079 = shalt.err (!%p2076_p7)
}
  0x12   :  { %s2199_s11 = smov 128   ;;  %s2200_s12 = smov 8  }
  0x13   :  { %37 = dma.hbm_to_vmem [thread:$0]  %s2529_s1, 2048, %s32_s25, [#allocation6], %s2199_s11, %s2199_s11, %s2200_s12  }
  0x14   :  { %s2201_s15 = smov [#allocation8]   ;;  %s2202_s17 = smov [#allocation2]  }
  0x15   :  { %s55_s16 = sshll.u32 %s2201_s15, 4  ;;  %s22_s18 = sshll.u32 %s2202_s17, 4  ;;  %s56_s16 = int_to_ptr.vmem [resolvable:$true] %s55_s16  ;;  %s23_s18 = int_to_ptr.vmem [resolvable:$true] %s22_s18 }
  0x16   :  { %s2080_s21 = scalar_lea.hbm %s2531_s3, 2048 }
  0x17   :  { %p2081_p8 = scmp.ne.s32.totalorder %s2531_s3, %s2080_s21  ;;  %p2084_p9 = scmp.lt.u32.totalorder %s2080_s21, %s2531_s3 }
  0x19   :  { %p2086_p10 = pnand %p2084_p9, %p2081_p8 }
  0x1b   :  { %2089 = shalt.err (!%p2086_p10)
}
  0x1c   :  { %s2090_s1 = scalar_lea.vmem %s56_s16, 2048  ;;  %p2095_p12 = scmp.lt.s32.totalorder %s56_s16, %s56_s16 }
  0x1d   :  { %p2091_p11 = scmp.ne.s32.totalorder %s56_s16, %s2090_s1  ;;  %p2096_p13 = scmp.lt.s32.totalorder %s2090_s1, %s2090_s1 }
  0x1f   :  { %p2097_p0 = por %p2096_p13, %p2095_p12 }
  0x21   :  { %p2098_p1 = pnand %p2097_p0, %p2091_p11 }
  0x23   :  { %2101 = shalt.err (!%p2098_p1)
}
  0x24   :  { %61 = dma.hbm_to_vmem [thread:$0]  %s2531_s3, 2048, %s56_s16, [#allocation9], %s2199_s11, %s2199_s11, %s2200_s12  }
  0x25   :  { %s2102_s30 = scalar_lea.hbm %s2528_s0, 128 }
  0x26   :  { %p2103_p2 = scmp.ne.s32.totalorder %s2528_s0, %s2102_s30  ;;  %p2106_p3 = scmp.lt.u32.totalorder %s2102_s30, %s2528_s0 }
  0x28   :  { %p2108_p4 = pnand %p2106_p3, %p2103_p2 }
  0x2a   :  { %2111 = shalt.err (!%p2108_p4)
}
  0x2b   :  { %s2112_s14 = scalar_lea.vmem %s23_s18, 128  ;;  %p2117_p6 = scmp.lt.s32.totalorder %s23_s18, %s23_s18 }
  0x2c   :  { %p2113_p5 = scmp.ne.s32.totalorder %s23_s18, %s2112_s14  ;;  %p2118_p7 = scmp.lt.s32.totalorder %s2112_s14, %s2112_s14 }
  0x2e   :  { %p2119_p8 = por %p2118_p7, %p2117_p6 }
  0x30   :  { %p2120_p9 = pnand %p2119_p8, %p2113_p5 }
  0x32   :  { %2123 = shalt.err (!%p2120_p9)
}
  0x33   :  { %25 = dma.hbm_to_vmem [thread:$0]  %s2528_s0, 128, %s23_s18, [#allocation3]  }
  0x34   :  { %s2203_s16 = smov [#allocation7]   ;;  %s2204_s19 = smov [#allocation10]  }
  0x35   :  { %s43_s17 = sshll.u32 %s2203_s16, 4  ;;  %s69_s20 = sshll.u32 %s2204_s19, 4  ;;  %s44_s17 = int_to_ptr.vmem [resolvable:$true] %s43_s17  ;;  %s70_s20 = int_to_ptr.vmem [resolvable:$true] %s69_s20 }
  0x36   :  { %s2124_s23 = scalar_lea.hbm %s2530_s2, 2048 }
  0x37   :  { %p2125_p10 = scmp.ne.s32.totalorder %s2530_s2, %s2124_s23  ;;  %p2128_p11 = scmp.lt.u32.totalorder %s2124_s23, %s2530_s2 }
  0x39   :  { %p2130_p12 = pnand %p2128_p11, %p2125_p10 }
  0x3b   :  { %2133 = shalt.err (!%p2130_p12)
}
  0x3c   :  { %s2134_s0 = scalar_lea.vmem %s44_s17, 2048  ;;  %p2139_p0 = scmp.lt.s32.totalorder %s44_s17, %s44_s17 }
  0x3d   :  { %p2135_p13 = scmp.ne.s32.totalorder %s44_s17, %s2134_s0  ;;  %p2140_p1 = scmp.lt.s32.totalorder %s2134_s0, %s2134_s0 }
  0x3f   :  { %p2141_p2 = por %p2140_p1, %p2139_p0 }
  0x41   :  { %p2142_p3 = pnand %p2141_p2, %p2135_p13 }
  0x43   :  { %2145 = shalt.err (!%p2142_p3)
}
  0x44   :  { %49 = dma.hbm_to_vmem [thread:$0]  %s2530_s2, 2048, %s44_s17, [#allocation6], %s2199_s11, %s2199_s11, %s2200_s12  }
  0x45   :  { %s2146_s30 = scalar_lea.hbm %s2533_s5, 2048 }
  0x46   :  { %p2147_p4 = scmp.ne.s32.totalorder %s2533_s5, %s2146_s30  ;;  %p2150_p5 = scmp.lt.u32.totalorder %s2146_s30, %s2533_s5 }
  0x48   :  { %p2152_p6 = pnand %p2150_p5, %p2147_p4 }
  0x4a   :  { %2155 = shalt.err (!%p2152_p6)
}
  0x4b   :  { %s2156_s14 = scalar_lea.vmem %s70_s20, 2048  ;;  %p2161_p8 = scmp.lt.s32.totalorder %s70_s20, %s70_s20 }
  0x4c   :  { %p2157_p7 = scmp.ne.s32.totalorder %s70_s20, %s2156_s14  ;;  %p2162_p9 = scmp.lt.s32.totalorder %s2156_s14, %s2156_s14 }
  0x4e   :  { %p2163_p10 = por %p2162_p9, %p2161_p8 }
  0x50   :  { %p2164_p11 = pnand %p2163_p10, %p2157_p7 }
  0x52   :  { %2167 = shalt.err (!%p2164_p11)
}
  0x53   :  { %75 = dma.hbm_to_vmem [thread:$0]  %s2533_s5, 2048, %s70_s20, [#allocation9], %s2199_s11, %s2199_s11, %s2200_s12  }
  0x54   :  { %2190 = dma.done.wait [#allocation3], 128  }
  0x55   :  { %2191 = vsyncadd [#allocation3], 4294967168 }
  0x56   :  { %2192 = dma.done.wait [#allocation6], 4096  }
  0x57   :  { %2193 = vsyncadd [#allocation6], 4294963200 }
  0x58   :  { %2194 = dma.done.wait [#allocation9], 4096  }
  0x59   :  { %2195 = vsyncadd [#allocation9], 4294963200  ;;  %v94_v0 = vlaneseq  ;;  %v93_v5 = vld [vmem:[#allocation2] sm:$0xff]  ;;  %v176_v6 = vld [vmem:[#allocation5] sm:$0xff]  ;;  %vm2207_vm8 = vmmov 0   ;;  %s2209_s15 = smov [#allocation11]  }
  0x5a   :  { %v177_v7 = vld [vmem:[#allocation5 + $0x8] sm:$0xff]  ;;  %v178_v11 = vld [vmem:[#allocation5 + $0x10] sm:$0xff]  ;;  %v179_v12 = vld [vmem:[#allocation5 + $0x18] sm:$0xff]  ;;  %s1117_s16 = sshll.u32 %s2209_s15, 4  ;;  %s1118_s16 = int_to_ptr.vmem [resolvable:$true] %s1117_s16 }
  0x5b   :  { %v97_v1 = vshrl.u32 %v94_v0, 7  ;;  %v1750_v10 = vpack.c.bf16 %v177_v7, %v176_v6  ;;  %v1754_v14 = vpack.c.bf16 %v179_v12, %v178_v11  ;;  %v180_v15 = vld [vmem:[#allocation5 + $0x20] sm:$0xff]  ;;  %v181_v16 = vld [vmem:[#allocation5 + $0x28] sm:$0xff]  ;;  %v182_v23 = vld [vmem:[#allocation5 + $0x30] sm:$0xff]  ;;  %s2168_s17 = scalar_lea.vmem %s1118_s16, 128  ;;  %p2173_p13 = scmp.lt.s32.totalorder %s1118_s16, %s1118_s16 }
  0x5c   :  { %v1758_v21 = vpack.c.bf16 %v181_v16, %v180_v15  ;;  %v297_v22 = vld [vmem:[#allocation7] sm:$0xff]  ;;  %v183_v24 = vld [vmem:[#allocation5 + $0x38] sm:$0xff]  ;;  %v298_v25 = vld [vmem:[#allocation7 + $0x8] sm:$0xff]  ;;  %p2169_p12 = scmp.ne.s32.totalorder %s1118_s16, %s2168_s17  ;;  %p2174_p0 = scmp.lt.s32.totalorder %s2168_s17, %s2168_s17 }
  0x5d   :  { %v98_v2 = vsub.s32 0, %v97_v1  ;;  %v112_v3 = vsub.s32 2, %v97_v1  ;;  %v105_v4 = vsub.s32 1, %v97_v1  ;;  %v119_v8 = vsub.s32 3, %v97_v1  ;;  %1751 = vmatprep.subr.bf16.mxu0 %v1750_v10  ;;  %v299_v29 = vld [vmem:[#allocation7 + $0x10] sm:$0xff]  ;;  %v300_v30 = vld [vmem:[#allocation7 + $0x18] sm:$0xff] }
  0x5e   :  { %v126_v18 = vsub.s32 4, %v97_v1  ;;  %1753 = vmatpush3.bf16.msra.mxu0 %v1750_v10  ;;  %v133_v20 = vsub.s32 5, %v97_v1  ;;  %v140_v27 = vsub.s32 6, %v97_v1  ;;  %v1782_v28 = vpack.c.bf16 %v298_v25, %v297_v22  ;;  %v301_v34 = vld [vmem:[#allocation7 + $0x20] sm:$0xff]  ;;  %v302_v35 = vld [vmem:[#allocation7 + $0x28] sm:$0xff]  ;;  %v303_v42 = vld [vmem:[#allocation7 + $0x30] sm:$0xff]  ;;  %p2175_p1 = por %p2174_p0, %p2173_p13 }
  0x5f   :  { %v99_v9 = vrot.slane %v93_v5, %v98_v2  ;;  %v113_v13 = vrot.slane %v93_v5, %v112_v3  ;;  %v106_v17 = vrot.slane %v93_v5, %v105_v4  ;;  %v120_v19 = vrot.slane %v93_v5, %v119_v8  ;;  %1755 = vmatprep.subr.bf16.mxu0 %v1754_v14  ;;  %v184_v37 = vld [vmem:[#allocation5 + $0x40] sm:$0xff]  ;;  %v185_v38 = vld [vmem:[#allocation5 + $0x48] sm:$0xff]  ;;  %v304_v43 = vld [vmem:[#allocation7 + $0x38] sm:$0xff] }
  0x60   :  { %v127_v26 = vrot.slane %v93_v5, %v126_v18  ;;  %v134_v31 = vrot.slane %v93_v5, %v133_v20  ;;  %v147_v32 = vsub.s32 7, %v97_v1  ;;  %v1786_v33 = vpack.c.bf16 %v300_v30, %v299_v29  ;;  %1783 = vmatprep.subr.bf16.mxu1 %v1782_v28  ;;  %v186_v45 = vld [vmem:[#allocation5 + $0x50] sm:$0xff]  ;;  %v187_v46 = vld [vmem:[#allocation5 + $0x58] sm:$0xff]  ;;  %v305_v48 = vld [vmem:[#allocation7 + $0x40] sm:$0xff]  ;;  %p2176_p2 = pnand %p2175_p1, %p2169_p12 }
  0x61   :  { %101 = vbcast.lane.b32.xlu0 %v99_v9, 256  ;;  %115 = vbcast.lane.b32.xlu1 %v113_v13, 256  ;;  %v1762_v36 = vpack.c.bf16 %v183_v24, %v182_v23  ;;  %v141_v39 = vrot.slane %v93_v5, %v140_v27  ;;  %v1790_v40 = vpack.c.bf16 %v302_v35, %v301_v34  ;;  %v306_v49 = vld [vmem:[#allocation7 + $0x48] sm:$0xff]  ;;  %v188_v51 = vld [vmem:[#allocation5 + $0x60] sm:$0xff]  ;;  %v307_v54 = vld [vmem:[#allocation7 + $0x50] sm:$0xff]  ;;  %v2205_v4 = vmov 0.0|0.0  }
  0x62   :  { %1757 = vmatpush3.bf16.msra.mxu0 %v1754_v14  ;;  %1785 = vmatpush3.bf16.msra.mxu1 %v1782_v28  ;;  %v148_v41 = vrot.slane %v93_v5, %v147_v32  ;;  %v1766_v44 = vpack.c.bf16 %v185_v38, %v184_v37  ;;  %v1794_v47 = vpack.c.bf16 %v304_v43, %v303_v42  ;;  %v189_v52 = vld [vmem:[#allocation5 + $0x68] sm:$0xff]  ;;  %v308_v55 = vld [vmem:[#allocation7 + $0x58] sm:$0xff]  ;;  %v190_v57 = vld [vmem:[#allocation5 + $0x70] sm:$0xff]  ;;  %v95_v5 = vand.u32 127, %v94_v0 }
  0x63   :  { %1759 = vmatprep.subr.bf16.mxu0 %v1758_v21  ;;  %1787 = vmatprep.subr.bf16.mxu1 %v1786_v33  ;;  %v1770_v50 = vpack.c.bf16 %v187_v46, %v186_v45  ;;  %v1798_v53 = vpack.c.bf16 %v306_v49, %v305_v48  ;;  %v1774_v56 = vpack.c.bf16 %v189_v52, %v188_v51  ;;  %v191_v58 = vld [vmem:[#allocation5 + $0x78] sm:$0xff]  ;;  %v309_v60 = vld [vmem:[#allocation7 + $0x60] sm:$0xff]  ;;  %v310_v61 = vld [vmem:[#allocation7 + $0x68] sm:$0xff]  ;;  %v2206_v10 = vmov 1.0  }
  0x64   :  { %v1802_v59 = vpack.c.bf16 %v308_v55, %v307_v54  ;;  %v1778_v62 = vpack.c.bf16 %v191_v58, %v190_v57  ;;  %v1806_v63 = vpack.c.bf16 %v310_v61, %v309_v60  ;;  %v311_v1 = vld [vmem:[#allocation7 + $0x70] sm:$0xff]  ;;  %v312_v2 = vld [vmem:[#allocation7 + $0x78] sm:$0xff]  ;;  %v425_v7 = vld [vmem:[#allocation8] sm:$0xff]  ;;  %v2208_v38 = vmov 0.0  }
  0x65   :  { %108 = vbcast.lane.b32.xlu0 %v106_v17, 256  ;;  %122 = vbcast.lane.b32.xlu1 %v120_v19, 256  ;;  %v1810_v3 = vpack.c.bf16 %v312_v2, %v311_v1  ;;  %v426_v8 = vld [vmem:[#allocation8 + $0x8] sm:$0xff]  ;;  %v427_v13 = vld [vmem:[#allocation8 + $0x10] sm:$0xff]  ;;  %v428_v14 = vld [vmem:[#allocation8 + $0x18] sm:$0xff] }
  0x66   :  { %1761 = vmatpush3.bf16.msra.mxu0 %v1758_v21  ;;  %1789 = vmatpush3.bf16.msra.mxu1 %v1786_v33  ;;  %v2326_v11 = vpack.c.bf16 %v426_v8, %v425_v7  ;;  %v2329_v16 = vpack.c.bf16 %v428_v14, %v427_v13  ;;  %v429_v0 = vld [vmem:[#allocation8 + $0x20] sm:$0xff]  ;;  %v430_v17 = vld [vmem:[#allocation8 + $0x28] sm:$0xff]  ;;  %v431_v21 = vld [vmem:[#allocation8 + $0x30] sm:$0xff] }
  0x67   :  { %1763 = vmatprep.subr.bf16.mxu0 %v1762_v36  ;;  %1791 = vmatprep.subr.bf16.mxu1 %v1790_v40  ;;  %v2333_v20 = vpack.c.bf16 %v430_v17, %v429_v0  ;;  %v432_v22 = vld [vmem:[#allocation8 + $0x38] sm:$0xff]  ;;  %v434_v27 = vld [vmem:[#allocation8 + $0x48] sm:$0xff]  ;;  %v435_v29 = vld [vmem:[#allocation8 + $0x50] sm:$0xff] }
  0x68   :  { %v2337_v25 = vpack.c.bf16 %v432_v22, %v431_v21  ;;  %v436_v30 = vld [vmem:[#allocation8 + $0x58] sm:$0xff]  ;;  %v437_v32 = vld [vmem:[#allocation8 + $0x60] sm:$0xff]  ;;  %v438_v33 = vld [vmem:[#allocation8 + $0x68] sm:$0xff] }
  0x69   :  { %129 = vbcast.lane.b32.xlu0 %v127_v26, 256  ;;  %136 = vbcast.lane.b32.xlu1 %v134_v31, 256  ;;  %v433_v26 = vld [vmem:[#allocation8 + $0x40] sm:$0xff]  ;;  %v2345_v31 = vpack.c.bf16 %v436_v30, %v435_v29  ;;  %v2349_v34 = vpack.c.bf16 %v438_v33, %v437_v32  ;;  %v439_v35 = vld [vmem:[#allocation8 + $0x70] sm:$0xff]  ;;  %v1144_v49 = vld [vmem:[%s2532_s4] ss:$0 sm:$0xff] }
  0x6a   :  { %1765 = vmatpush3.bf16.msra.mxu0 %v1762_v36  ;;  %1793 = vmatpush3.bf16.msra.mxu1 %v1790_v40  ;;  %v2341_v28 = vpack.c.bf16 %v434_v27, %v433_v26  ;;  %v440_v36 = vld [vmem:[#allocation8 + $0x78] sm:$0xff]  ;;  %v1018_v26 = vld [vmem:[#allocation10 + $0x8] sm:$0xff]  ;;  %v1019_v27 = vld [vmem:[#allocation10 + $0x10] sm:$0xff] }
  0x6b   :  { %1767 = vmatprep.subr.bf16.mxu0 %v1766_v44  ;;  %1795 = vmatprep.subr.bf16.mxu1 %v1794_v47  ;;  %v2354_v37 = vpack.c.bf16 %v440_v36, %v439_v35  ;;  %v1020_v29 = vld [vmem:[#allocation10 + $0x18] sm:$0xff]  ;;  %v1022_v32 = vld [vmem:[#allocation10 + $0x28] sm:$0xff] }
  0x6c   :  { %v2010_v30 = vpack.c.bf16 %v1020_v29, %v1019_v27  ;;  %v1024_v35 = vld [vmem:[#allocation10 + $0x38] sm:$0xff] }
  0x6d   :  { %143 = vbcast.lane.b32.xlu0 %v141_v39, 256  ;;  %150 = vbcast.lane.b32.xlu1 %v148_v41, 256 }
  0x6e   :  { %1769 = vmatpush3.bf16.msra.mxu0 %v1766_v44  ;;  %1797 = vmatpush3.bf16.msra.mxu1 %v1794_v47 }
  0x6f   :  { %1771 = vmatprep.subr.bf16.mxu0 %v1770_v50  ;;  %1799 = vmatprep.subr.bf16.mxu1 %v1798_v53 }
  0x72   :  { %1773 = vmatpush3.bf16.msra.mxu0 %v1770_v50  ;;  %1801 = vmatpush3.bf16.msra.mxu1 %v1798_v53 }
  0x73   :  { %1775 = vmatprep.subr.bf16.mxu0 %v1774_v56  ;;  %1803 = vmatprep.subr.bf16.mxu1 %v1802_v59 }
  0x76   :  { %1777 = vmatpush3.bf16.msra.mxu0 %v1774_v56  ;;  %1805 = vmatpush3.bf16.msra.mxu1 %v1802_v59 }
  0x77   :  { %1779 = vmatprep.subr.bf16.mxu0 %v1778_v62  ;;  %1807 = vmatprep.subr.bf16.mxu1 %v1806_v63 }
  0x7a   :  { %1781 = vmatpush3.bf16.msra.mxu0 %v1778_v62  ;;  %1809 = vmatpush3.bf16.msra.mxu1 %v1806_v63 }
  0x7b   :  { %1814 = vmatprep.subr.bf16.mxu0 %v2205_v4  ;;  %1811 = vmatprep.subr.bf16.mxu1 %v1810_v3 }
  0x7e   :  { %1813 = vmatpush3.bf16.msra.mxu1 %v1810_v3 }
  0x7f   :  { %1838 = vmatprep.subr.bf16.mxu1 %v2205_v4 }
  0xd3   :  { %v102_v6 = vpop.permute.xlu0 %101  ;;  %v116_v9 = vpop.permute.xlu1 %115 }
  0xd4   :  { %vm152_vm0 = vcmp.eq.s32.totalorder %v102_v6, %v95_v5  ;;  %vm154_vm1 = vcmp.eq.s32.totalorder %v116_v9, %v95_v5 }
  0xd5   :  { %1379 = vmatprep.mubr.msk.f32.mxu0 %vm152_vm0, %v2206_v10 }
  0xd7   :  { %v109_v12 = vpop.permute.xlu0 %108  ;;  %v123_v15 = vpop.permute.xlu1 %122 }
  0xd8   :  { %vm153_vm2 = vcmp.eq.s32.totalorder %v109_v12, %v95_v5  ;;  %vm155_vm3 = vcmp.eq.s32.totalorder %v123_v15, %v95_v5 }
  0xd9   :  { %1380 = vmatmul.mubr.msk.f32.vlgmr.msra.gmra.mrb[0].mxu0 %vm153_vm2, %v2206_v10 }
  0xda   :  { %1816 = vmatpush3.bf16.msra.mxu0 %v2326_v11  ;;  %1382 = vmatprep.mubr.msk.f32.mxu0 %vm154_vm1, %v2206_v10 }
  0xdb   :  { %1817 = vmatprep.subr.bf16.mxu0 %v2205_v4  ;;  %v130_v18 = vpop.permute.xlu0 %129  ;;  %v137_v19 = vpop.permute.xlu1 %136 }
  0xdc   :  { %vm156_vm4 = vcmp.eq.s32.totalorder %v130_v18, %v95_v5  ;;  %vm157_vm5 = vcmp.eq.s32.totalorder %v137_v19, %v95_v5 }
  0xdd   :  { %1383 = vmatmul.mubr.msk.f32.gmra.mrb[2].mxu0 %vm155_vm3, %v2206_v10 }
  0xde   :  { %1819 = vmatpush3.bf16.msra.mxu0 %v2329_v16  ;;  %1385 = vmatprep.mubr.msk.f32.mxu0 %vm156_vm4, %v2206_v10 }
  0xdf   :  { %1820 = vmatprep.subr.bf16.mxu0 %v2205_v4  ;;  %v144_v23 = vpop.permute.xlu0 %143  ;;  %v151_v24 = vpop.permute.xlu1 %150 }
  0xe0   :  { %vm158_vm6 = vcmp.eq.s32.totalorder %v144_v23, %v95_v5  ;;  %vm159_vm7 = vcmp.eq.s32.totalorder %v151_v24, %v95_v5 }
  0xe1   :  { %1386 = vmatmul.mubr.msk.f32.gmra.mrb[4].mxu0 %vm157_vm5, %v2206_v10 }
  0xe2   :  { %1822 = vmatpush3.bf16.msra.mxu0 %v2333_v20  ;;  %1388 = vmatprep.mubr.msk.f32.mxu0 %vm158_vm6, %v2206_v10 }
  0xe3   :  { %1823 = vmatprep.subr.bf16.mxu0 %v2205_v4 }
  0xe5   :  { %1389 = vmatmul.mubr.msk.f32.gmra.mrb[6].mxu0 %vm159_vm7, %v2206_v10 }
  0xe6   :  { %1825 = vmatpush3.bf16.msra.mxu0 %v2337_v25  ;;  %1467 = vmatprep.mubr.msk.f32.mxu0 %vm2207_vm8, %v2208_v38 }
  0xe7   :  { %1826 = vmatprep.subr.bf16.mxu0 %v2205_v4 }
  0xea   :  { %1828 = vmatpush3.bf16.msra.mxu0 %v2341_v28 }
  0xeb   :  { %1829 = vmatprep.subr.bf16.mxu0 %v2205_v4 }
  0xee   :  { %1831 = vmatpush3.bf16.msra.mxu0 %v2345_v31 }
  0xef   :  { %1832 = vmatprep.subr.bf16.mxu0 %v2205_v4 }
  0xf2   :  { %1834 = vmatpush3.bf16.msra.mxu0 %v2349_v34 }
  0xf3   :  { %1835 = vmatprep.subr.bf16.mxu0 %v2205_v4 }
  0xf6   :  { %1837 = vmatpush3.bf16.msra.mxu0 %v2354_v37 }
  0xf7   :  { %1862 = vmatprep.subr.bf16.mxu0 %v2205_v4 }
  0xf9   :  { %1468 = vmatmul.mubr.f32.vlgmr.msra.gmra.mrb[8].mxu0 %v2208_v38 }
  0xfa   :  { %1864 = vmatpush3.bf16.msra.mxu0 %v2326_v11  ;;  %1537 = vmatprep.mubr.msk.f32.mxu0 %vm2207_vm8, %v2208_v38 }
  0xfb   :  { %1865 = vmatprep.subr.bf16.mxu0 %v2205_v4 }
  0xfe   :  { %1867 = vmatpush3.bf16.msra.mxu0 %v2329_v16 }
  0xff   :  { %1868 = vmatprep.subr.bf16.mxu0 %v2205_v4 }
 0x102   :  { %1870 = vmatpush3.bf16.msra.mxu0 %v2333_v20 }
 0x103   :  { %1871 = vmatprep.subr.bf16.mxu0 %v2205_v4 }
 0x106   :  { %1873 = vmatpush3.bf16.msra.mxu0 %v2337_v25 }
 0x107   :  { %1874 = vmatprep.subr.bf16.mxu0 %v2205_v4 }
 0x10a   :  { %1876 = vmatpush3.bf16.msra.mxu0 %v2341_v28 }
 0x10b   :  { %1877 = vmatprep.subr.bf16.mxu0 %v2205_v4 }
 0x10e   :  { %1879 = vmatpush3.bf16.msra.mxu0 %v2345_v31 }
 0x10f   :  { %1880 = vmatprep.subr.bf16.mxu0 %v2205_v4 }
 0x112   :  { %1882 = vmatpush3.bf16.msra.mxu0 %v2349_v34 }
 0x113   :  { %1883 = vmatprep.subr.bf16.mxu0 %v2205_v4 }
 0x116   :  { %1885 = vmatpush3.bf16.msra.mxu0 %v2354_v37 }
 0x117   :  { %1910 = vmatprep.subr.bf16.mxu0 %v2205_v4 }
 0x1ac   :  { %v1381_v39 = vpop.f32.mrb[0].mxu0 }
 0x1ad   :  { %v258_v40 = vpop.f32.mrb[1].mxu0 }
 0x1ae   :  { %1423 = vmatprep.mubr.f32.mxu1 %v258_v40 }
 0x1af   :  { %1424 = vmatmul.mubr.f32.vlgmr.msra.gmra.mrb[0].mxu1 %v1381_v39 }
 0x1b0   :  { %1840 = vmatpush3.bf16.msra.mxu1 %v2326_v11  ;;  %v1384_v41 = vpop.f32.mrb[2].mxu0 }
 0x1b1   :  { %v268_v42 = vpop.f32.mrb[3].mxu0  ;;  %1841 = vmatprep.subr.bf16.mxu1 %v2205_v4 }
 0x1b2   :  { %1426 = vmatprep.mubr.f32.mxu1 %v268_v42 }
 0x1b3   :  { %1427 = vmatmul.mubr.f32.gmra.mrb[2].mxu1 %v1384_v41 }
 0x1b4   :  { %1843 = vmatpush3.bf16.msra.mxu1 %v2329_v16  ;;  %v1387_v43 = vpop.f32.mrb[4].mxu0 }
 0x1b5   :  { %v278_v44 = vpop.f32.mrb[5].mxu0  ;;  %1844 = vmatprep.subr.bf16.mxu1 %v2205_v4 }
 0x1b6   :  { %1429 = vmatprep.mubr.f32.mxu1 %v278_v44  ;;  %v1027_v44 = vld [vmem:[#allocation10 + $0x50] sm:$0xff] }
 0x1b7   :  { %1430 = vmatmul.mubr.f32.gmra.mrb[4].mxu1 %v1387_v43 }
 0x1b8   :  { %1846 = vmatpush3.bf16.msra.mxu1 %v2333_v20  ;;  %v1390_v45 = vpop.f32.mrb[6].mxu0 }
 0x1b9   :  { %v288_v46 = vpop.f32.mrb[7].mxu0  ;;  %1847 = vmatprep.subr.bf16.mxu1 %v2205_v4 }
 0x1ba   :  { %1432 = vmatprep.mubr.f32.mxu1 %v288_v46 }
 0x1bb   :  { %1433 = vmatmul.mubr.f32.gmra.mrb[6].mxu1 %v1390_v45  ;;  %v1028_v45 = vld [vmem:[#allocation10 + $0x58] sm:$0xff] }
 0x1bc   :  { %1849 = vmatpush3.bf16.msra.mxu1 %v2337_v25  ;;  %1502 = vmatprep.mubr.msk.f32.mxu1 %vm2207_vm8, %v2208_v38  ;;  %v2022_v46 = vpack.c.bf16 %v1028_v45, %v1027_v44 }
 0x1bd   :  { %1850 = vmatprep.subr.bf16.mxu1 %v2205_v4 }
 0x1c0   :  { %1852 = vmatpush3.bf16.msra.mxu1 %v2341_v28 }
 0x1c1   :  { %1853 = vmatprep.subr.bf16.mxu1 %v2205_v4 }
 0x1c4   :  { %1855 = vmatpush3.bf16.msra.mxu1 %v2345_v31 }
 0x1c5   :  { %1856 = vmatprep.subr.bf16.mxu1 %v2205_v4 }
 0x1c8   :  { %1858 = vmatpush3.bf16.msra.mxu1 %v2349_v34 }
 0x1c9   :  { %1859 = vmatprep.subr.bf16.mxu1 %v2205_v4 }
 0x1cc   :  { %1861 = vmatpush3.bf16.msra.mxu1 %v2354_v37  ;;  %v507_v47 = vpop.f32.mrb[8].mxu0 }
 0x1cd   :  { %1886 = vmatprep.subr.bf16.mxu1 %v2205_v4  ;;  %v1469_v48 = vpop.f32.mrb[9].mxu0 }
 0x1ce   :  { %v1030_v48 = vld [vmem:[#allocation10 + $0x68] sm:$0xff] }
 0x282   :  { %v1425_v50 = vpop.f32.mrb[0].mxu1 }
 0x283   :  { %v392_v51 = vadd.f32 %v1425_v50, %v1144_v49  ;;  %v386_v52 = vpop.f32.mrb[1].mxu1  ;;  %v1031_v50 = vld [vmem:[#allocation10 + $0x70] sm:$0xff] }
 0x284   :  { %v387_v53 = vadd.f32 %v1144_v49, %v386_v52 }
 0x286   :  { %v511_v54 = vadd.f32 %v507_v47, %v387_v53  ;;  %v1428_v55 = vpop.f32.mrb[2].mxu1  ;;  %v1029_v47 = vld [vmem:[#allocation10 + $0x60] sm:$0xff] }
 0x287   :  { %v2400_v56 = vadd.f32 %v1428_v55, %v1144_v49  ;;  %v396_v57 = vpop.f32.mrb[3].mxu1 }
 0x288   :  { %2042 = vtanh.f32 %v511_v54  ;;  %v397_v58 = vadd.f32 %v1144_v49, %v396_v57  ;;  %v1145_v57 = vld [vmem:[%s2534_s6] ss:$0 sm:$0xff] }
 0x28a   :  { %v1431_v59 = vpop.f32.mrb[4].mxu1 }
 0x28b   :  { %v2402_v60 = vadd.f32 %v1431_v59, %v1144_v49  ;;  %v406_v61 = vpop.f32.mrb[5].mxu1 }
 0x28c   :  { %v2404_v62 = vadd.f32 %v1144_v49, %v406_v61 }
 0x28e   :  { %v1434_v63 = vpop.f32.mrb[6].mxu1 }
 0x28f   :  { %v2406_v1 = vadd.f32 %v1434_v63, %v1144_v49  ;;  %v416_v2 = vpop.f32.mrb[7].mxu1 }
 0x290   :  { %v2408_v3 = vadd.f32 %v1144_v49, %v416_v2  ;;  %v2025_v49 = vpack.c.bf16 %v1030_v48, %v1029_v47 }
 0x292   :  { %v2043_v5 = vpop.eup %2042 }
 0x293   :  { %1503 = vmatmul.mubr.f32.vlgmr.msra.gmra.mrb[8].mxu1 %v2043_v5 }
 0x294   :  { %1888 = vmatpush3.bf16.msra.mxu1 %v2326_v11  ;;  %1572 = vmatprep.mubr.msk.f32.mxu1 %vm2207_vm8, %v2208_v38 }
 0x295   :  { %1889 = vmatprep.subr.bf16.mxu1 %v2205_v4 }
 0x298   :  { %1891 = vmatpush3.bf16.msra.mxu1 %v2329_v16 }
 0x299   :  { %1892 = vmatprep.subr.bf16.mxu1 %v2205_v4 }
 0x29c   :  { %1894 = vmatpush3.bf16.msra.mxu1 %v2333_v20 }
 0x29d   :  { %1895 = vmatprep.subr.bf16.mxu1 %v2205_v4 }
 0x2a0   :  { %1897 = vmatpush3.bf16.msra.mxu1 %v2337_v25 }
 0x2a1   :  { %1898 = vmatprep.subr.bf16.mxu1 %v2205_v4 }
 0x2a4   :  { %1900 = vmatpush3.bf16.msra.mxu1 %v2341_v28 }
 0x2a5   :  { %1901 = vmatprep.subr.bf16.mxu1 %v2205_v4 }
 0x2a8   :  { %1903 = vmatpush3.bf16.msra.mxu1 %v2345_v31 }
 0x2a9   :  { %1904 = vmatprep.subr.bf16.mxu1 %v2205_v4 }
 0x2ac   :  { %1906 = vmatpush3.bf16.msra.mxu1 %v2349_v34 }
 0x2ad   :  { %1907 = vmatprep.subr.bf16.mxu1 %v2205_v4 }
 0x2b0   :  { %1909 = vmatpush3.bf16.msra.mxu1 %v2354_v37 }
 0x2b1   :  { %1934 = vmatprep.subr.bf16.mxu1 %v2205_v4 }
 0x366   :  { %v579_v6 = vpop.f32.mrb[8].mxu1 }
 0x367   :  { %v583_v7 = vadd.f32 %v579_v6, %v392_v51  ;;  %v1504_v8 = vpop.f32.mrb[9].mxu1  ;;  %v1032_v51 = vld [vmem:[#allocation10 + $0x78] sm:$0xff] }
 0x368   :  { %v2028_v52 = vpack.c.bf16 %v1032_v51, %v1031_v50 }
 0x369   :  { %2044 = vtanh.f32 %v583_v7 }
 0x373   :  { %v2045_v9 = vpop.eup %2044 }
 0x374   :  { %1538 = vmatmul.mubr.f32.vlgmr.msra.gmra.mrb[10].mxu0 %v2045_v9 }
 0x375   :  { %1912 = vmatpush3.bf16.msra.mxu0 %v2326_v11  ;;  %1607 = vmatprep.mubr.msk.f32.mxu0 %vm2207_vm8, %v2208_v38 }
 0x376   :  { %1913 = vmatprep.subr.bf16.mxu0 %v2205_v4 }
 0x379   :  { %1915 = vmatpush3.bf16.msra.mxu0 %v2329_v16 }
 0x37a   :  { %1916 = vmatprep.subr.bf16.mxu0 %v2205_v4 }
 0x37d   :  { %1918 = vmatpush3.bf16.msra.mxu0 %v2333_v20 }
 0x37e   :  { %1919 = vmatprep.subr.bf16.mxu0 %v2205_v4 }
 0x381   :  { %1921 = vmatpush3.bf16.msra.mxu0 %v2337_v25 }
 0x382   :  { %1922 = vmatprep.subr.bf16.mxu0 %v2205_v4 }
 0x385   :  { %1924 = vmatpush3.bf16.msra.mxu0 %v2341_v28 }
 0x386   :  { %1925 = vmatprep.subr.bf16.mxu0 %v2205_v4 }
 0x389   :  { %1927 = vmatpush3.bf16.msra.mxu0 %v2345_v31 }
 0x38a   :  { %1928 = vmatprep.subr.bf16.mxu0 %v2205_v4 }
 0x38d   :  { %1930 = vmatpush3.bf16.msra.mxu0 %v2349_v34 }
 0x38e   :  { %1931 = vmatprep.subr.bf16.mxu0 %v2205_v4 }
 0x391   :  { %1933 = vmatpush3.bf16.msra.mxu0 %v2354_v37 }
 0x392   :  { %1958 = vmatprep.subr.bf16.mxu0 %v2205_v4 }
 0x447   :  { %v651_v10 = vpop.f32.mrb[10].mxu0 }
 0x448   :  { %v655_v12 = vadd.f32 %v651_v10, %v397_v58  ;;  %v1539_v13 = vpop.f32.mrb[11].mxu0 }
 0x44a   :  { %2046 = vtanh.f32 %v655_v12 }
 0x454   :  { %v2047_v14 = vpop.eup %2046 }
 0x455   :  { %1573 = vmatmul.mubr.f32.vlgmr.msra.gmra.mrb[10].mxu1 %v2047_v14 }
 0x456   :  { %1936 = vmatpush3.bf16.msra.mxu1 %v2326_v11  ;;  %1642 = vmatprep.mubr.msk.f32.mxu1 %vm2207_vm8, %v2208_v38 }
 0x457   :  { %1937 = vmatprep.subr.bf16.mxu1 %v2205_v4 }
 0x45a   :  { %1939 = vmatpush3.bf16.msra.mxu1 %v2329_v16 }
 0x45b   :  { %1940 = vmatprep.subr.bf16.mxu1 %v2205_v4 }
 0x45e   :  { %1942 = vmatpush3.bf16.msra.mxu1 %v2333_v20 }
 0x45f   :  { %1943 = vmatprep.subr.bf16.mxu1 %v2205_v4 }
 0x462   :  { %1945 = vmatpush3.bf16.msra.mxu1 %v2337_v25 }
 0x463   :  { %1946 = vmatprep.subr.bf16.mxu1 %v2205_v4 }
 0x466   :  { %1948 = vmatpush3.bf16.msra.mxu1 %v2341_v28 }
 0x467   :  { %1949 = vmatprep.subr.bf16.mxu1 %v2205_v4 }
 0x46a   :  { %1951 = vmatpush3.bf16.msra.mxu1 %v2345_v31 }
 0x46b   :  { %1952 = vmatprep.subr.bf16.mxu1 %v2205_v4 }
 0x46e   :  { %1954 = vmatpush3.bf16.msra.mxu1 %v2349_v34 }
 0x46f   :  { %1955 = vmatprep.subr.bf16.mxu1 %v2205_v4 }
 0x472   :  { %1957 = vmatpush3.bf16.msra.mxu1 %v2354_v37 }
 0x473   :  { %1982 = vmatprep.subr.bf16.mxu1 %v2205_v4 }
 0x528   :  { %v723_v15 = vpop.f32.mrb[10].mxu1 }
 0x529   :  { %v727_v0 = vadd.f32 %v723_v15, %v2400_v56  ;;  %v1574_v17 = vpop.f32.mrb[11].mxu1 }
 0x52b   :  { %2048 = vtanh.f32 %v727_v0 }
 0x535   :  { %v2049_v18 = vpop.eup %2048 }
 0x536   :  { %1608 = vmatmul.mubr.f32.vlgmr.msra.gmra.mrb[12].mxu0 %v2049_v18 }
 0x537   :  { %1960 = vmatpush3.bf16.msra.mxu0 %v2326_v11  ;;  %1677 = vmatprep.mubr.msk.f32.mxu0 %vm2207_vm8, %v2208_v38 }
 0x538   :  { %1961 = vmatprep.subr.bf16.mxu0 %v2205_v4 }
 0x53b   :  { %1963 = vmatpush3.bf16.msra.mxu0 %v2329_v16 }
 0x53c   :  { %1964 = vmatprep.subr.bf16.mxu0 %v2205_v4 }
 0x53f   :  { %1966 = vmatpush3.bf16.msra.mxu0 %v2333_v20 }
 0x540   :  { %1967 = vmatprep.subr.bf16.mxu0 %v2205_v4 }
 0x543   :  { %1969 = vmatpush3.bf16.msra.mxu0 %v2337_v25 }
 0x544   :  { %1970 = vmatprep.subr.bf16.mxu0 %v2205_v4 }
 0x547   :  { %1972 = vmatpush3.bf16.msra.mxu0 %v2341_v28 }
 0x548   :  { %1973 = vmatprep.subr.bf16.mxu0 %v2205_v4 }
 0x54b   :  { %1975 = vmatpush3.bf16.msra.mxu0 %v2345_v31 }
 0x54c   :  { %1976 = vmatprep.subr.bf16.mxu0 %v2205_v4 }
 0x54f   :  { %1978 = vmatpush3.bf16.msra.mxu0 %v2349_v34 }
 0x550   :  { %1979 = vmatprep.subr.bf16.mxu0 %v2205_v4 }
 0x553   :  { %1981 = vmatpush3.bf16.msra.mxu0 %v2354_v37 }
 0x554   :  { %2006 = vmatprep.subr.bf16.mxu0 %v2205_v4 }
 0x609   :  { %v795_v19 = vpop.f32.mrb[12].mxu0 }
 0x60a   :  { %v799_v21 = vadd.f32 %v795_v19, %v2404_v62  ;;  %v1609_v22 = vpop.f32.mrb[13].mxu0 }
 0x60c   :  { %2050 = vtanh.f32 %v799_v21 }
 0x616   :  { %v2051_v23 = vpop.eup %2050 }
 0x617   :  { %1643 = vmatmul.mubr.f32.vlgmr.msra.gmra.mrb[12].mxu1 %v2051_v23 }
 0x618   :  { %1984 = vmatpush3.bf16.msra.mxu1 %v2326_v11  ;;  %1712 = vmatprep.mubr.msk.f32.mxu1 %vm2207_vm8, %v2208_v38 }
 0x619   :  { %1985 = vmatprep.subr.bf16.mxu1 %v2205_v4 }
 0x61c   :  { %1987 = vmatpush3.bf16.msra.mxu1 %v2329_v16 }
 0x61d   :  { %1988 = vmatprep.subr.bf16.mxu1 %v2205_v4 }
 0x620   :  { %1990 = vmatpush3.bf16.msra.mxu1 %v2333_v20 }
 0x621   :  { %1991 = vmatprep.subr.bf16.mxu1 %v2205_v4 }
 0x624   :  { %1993 = vmatpush3.bf16.msra.mxu1 %v2337_v25  ;;  %v1017_v25 = vld [vmem:[#allocation10] sm:$0xff] }
 0x625   :  { %1994 = vmatprep.subr.bf16.mxu1 %v2205_v4 }
 0x628   :  { %1996 = vmatpush3.bf16.msra.mxu1 %v2341_v28  ;;  %v2007_v28 = vpack.c.bf16 %v1018_v26, %v1017_v25 }
 0x629   :  { %1997 = vmatprep.subr.bf16.mxu1 %v2205_v4 }
 0x62c   :  { %1999 = vmatpush3.bf16.msra.mxu1 %v2345_v31  ;;  %v1021_v31 = vld [vmem:[#allocation10 + $0x20] sm:$0xff] }
 0x62d   :  { %2000 = vmatprep.subr.bf16.mxu1 %v2205_v4  ;;  %v2013_v33 = vpack.c.bf16 %v1022_v32, %v1021_v31 }
 0x630   :  { %2002 = vmatpush3.bf16.msra.mxu1 %v2349_v34  ;;  %v1023_v34 = vld [vmem:[#allocation10 + $0x30] sm:$0xff] }
 0x631   :  { %2003 = vmatprep.subr.bf16.mxu1 %v2205_v4  ;;  %v2016_v36 = vpack.c.bf16 %v1024_v35, %v1023_v34 }
 0x634   :  { %2005 = vmatpush3.bf16.msra.mxu1 %v2354_v37  ;;  %v1025_v37 = vld [vmem:[#allocation10 + $0x40] sm:$0xff] }
 0x6ea   :  { %v867_v11 = vpop.f32.mrb[12].mxu1 }
 0x6eb   :  { %v871_v16 = vadd.f32 %v867_v11, %v2402_v60  ;;  %v1644_v20 = vpop.f32.mrb[13].mxu1 }
 0x6ed   :  { %2052 = vtanh.f32 %v871_v16 }
 0x6f7   :  { %v2053_v24 = vpop.eup %2052 }
 0x6f8   :  { %1678 = vmatmul.mubr.f32.vlgmr.msra.gmra.mrb[14].mxu0 %v2053_v24 }
 0x6f9   :  { %1747 = vmatprep.mubr.msk.f32.mxu0 %vm2207_vm8, %v2208_v38  ;;  %2008 = vmatpush3.bf16.msra.mxu0 %v2007_v28  ;;  %v1026_v38 = vld [vmem:[#allocation10 + $0x48] sm:$0xff] }
 0x6fa   :  { %2009 = vmatprep.subr.bf16.mxu0 %v2205_v4  ;;  %v2019_v39 = vpack.c.bf16 %v1026_v38, %v1025_v37 }
 0x6fd   :  { %2011 = vmatpush3.bf16.msra.mxu0 %v2010_v30 }
 0x6fe   :  { %2012 = vmatprep.subr.bf16.mxu0 %v2205_v4 }
 0x701   :  { %2014 = vmatpush3.bf16.msra.mxu0 %v2013_v33 }
 0x702   :  { %2015 = vmatprep.subr.bf16.mxu0 %v2205_v4 }
 0x705   :  { %2017 = vmatpush3.bf16.msra.mxu0 %v2016_v36 }
 0x706   :  { %2018 = vmatprep.subr.bf16.mxu0 %v2205_v4 }
 0x709   :  { %2020 = vmatpush3.bf16.msra.mxu0 %v2019_v39 }
 0x70a   :  { %2021 = vmatprep.subr.bf16.mxu0 %v2205_v4 }
 0x70d   :  { %2023 = vmatpush3.bf16.msra.mxu0 %v2022_v46 }
 0x70e   :  { %2024 = vmatprep.subr.bf16.mxu0 %v2205_v4 }
 0x711   :  { %2026 = vmatpush3.bf16.msra.mxu0 %v2025_v49 }
 0x712   :  { %2027 = vmatprep.subr.bf16.mxu0 %v2205_v4 }
 0x715   :  { %2029 = vmatpush3.bf16.msra.mxu0 %v2028_v52 }
 0x7cb   :  { %v939_v40 = vpop.f32.mrb[14].mxu0 }
 0x7cc   :  { %v943_v41 = vadd.f32 %v939_v40, %v2408_v3  ;;  %v1679_v42 = vpop.f32.mrb[15].mxu0 }
 0x7ce   :  { %2054 = vtanh.f32 %v943_v41 }
 0x7d8   :  { %v2055_v43 = vpop.eup %2054 }
 0x7d9   :  { %1713 = vmatmul.mubr.f32.vlgmr.msra.gmra.mrb[14].mxu1 %v2055_v43 }
 0x8ac   :  { %v1011_v53 = vpop.f32.mrb[14].mxu1 }
 0x8ad   :  { %v1015_v54 = vadd.f32 %v1011_v53, %v2406_v1  ;;  %v1714_v55 = vpop.f32.mrb[15].mxu1 }
 0x8af   :  { %2056 = vtanh.f32 %v1015_v54 }
 0x8b9   :  { %v2057_v56 = vpop.eup %2056 }
 0x8ba   :  { %1748 = vmatmul.mubr.f32.vlgmr.msra.gmra.mrb[16].mxu0 %v2057_v56 }
 0x98d   :  { %v1106_v58 = vpop.f32.mrb[16].mxu0 }
 0x98e   :  { %v1107_v59 = vadd.f32 %v1145_v57, %v1106_v58  ;;  %v1749_v60 = vpop.f32.mrb[17].mxu0 }
 0x990   :  { %1110 = vst [vmem:[#allocation11] sm:$0xff] %v1107_v59 }
 0x991   :  { %2179 = shalt.err (!%p2176_p2)
}
 0x992   :  { %s2180_s21 = scalar_lea.hbm %s2535_s7, 128 }
 0x993   :  { %p2181_p3 = scmp.ne.s32.totalorder %s2535_s7, %s2180_s21  ;;  %p2184_p4 = scmp.lt.u32.totalorder %s2180_s21, %s2535_s7 }
 0x995   :  { %p2186_p5 = pnand %p2184_p4, %p2181_p3 }
 0x997   :  { %2189 = shalt.err (!%p2186_p5)
}
 0x998   :  { %1120 = dma.vmem_to_hbm [thread:$0]  %s1118_s16, 128, %s2535_s7, [#allocation4]  }
 0x999   :  { %2196 = dma.done.wait [#allocation4], 128  }
 0x99a   :  { %2197 = vsyncadd [#allocation4], 4294967168 }
 0x99b   :  { %1124 = vsyncpa [#allocation3], 1 }
 0x99c   :  { %1125 = vsyncpa [#allocation6], 1 }
 0x99d   :  { %1126 = vsyncpa [#allocation9], 1 }
 0x99e   :  { %1127 = vsyncpa [#allocation4], 1 }

</bundles_post_ra>
